<compile_context>
chip_gen: v7x
topology: tpu7x:2x2x1
jax: 0.10.0
libtpu: 0.0.40
codegen_flags: <defaults>
</compile_context>

<pallas_src>
import functools

import jax
import jax.numpy as jnp
from jax import lax
from jax.experimental import pallas as pl
from jax.experimental.pallas import tpu as pltpu

MARGIN = 2.0
PAIRWISE_EPS = 1e-6           # torch F.pairwise_distance default eps
_OUT_SUB, _OUT_LANE = 8, 128  # lane/sublane-aligned per-core output block


def _contrastive_kernel(o1_ref, o2_ref, label_ref, out_ref, acc_ref,
                        *, total_b, tile_b, needs_mask):
    p = pl.program_id(0)            # "parallel" axis (TensorCore split on v7x)
    i = pl.program_id(1)            # batch-tile reduction axis ("arbitrary")
    n_tiles = pl.num_programs(1)

    @pl.when(i == 0)
    def _init():
        acc_ref[...] = jnp.zeros_like(acc_ref)

    # Upcast after the (possibly bf16) DMA; all math in f32.
    o1 = o1_ref[...].astype(jnp.float32)                      # (TB, D)
    o2 = o2_ref[...].astype(jnp.float32)                      # (TB, D)
    label = label_ref[...].astype(jnp.float32)                # (1, TB) lane-dense

    diff = o1 - o2 + PAIRWISE_EPS                             # (TB, D)
    dist_sq = jnp.sum(diff * diff, axis=-1, keepdims=True)    # (TB, 1)
    dist = jnp.sqrt(dist_sq)                                  # (TB, 1)
    hinge = jnp.maximum(MARGIN - dist, 0.0)                   # (TB, 1)

    # per-row loss = base + label * gap  with
    #   base = d^2/2                (label-independent part)
    #   gap  = hinge^2 - d^2/2      (coefficient of label)
    base = 0.5 * dist_sq                                      # (TB, 1)
    gap = hinge * hinge - base                                # (TB, 1)

    if needs_mask:
        # Only compiled when a ragged last tile / overshoot tile can exist.
        # jnp.where (not arithmetic masking) so padded-garbage NaN/Inf rows
        # cannot propagate into the reductions.
        row_start = (p * n_tiles + i) * tile_b
        valid_col = (row_start + lax.broadcasted_iota(
            jnp.int32, (tile_b, 1), 0)) < total_b             # (TB, 1)
        valid_row = (row_start + lax.broadcasted_iota(
            jnp.int32, (1, tile_b), 1)) < total_b             # (1, TB)
        base = jnp.where(valid_col, base, 0.0)
        gap = jnp.where(valid_col, gap, 0.0)
        label = jnp.where(valid_row, label, 0.0)

    # Label-weighted row reduction on the (otherwise idle) MXU:
    #   (1, TB) @ (TB, 1) -> (1, 1).  Full-precision f32 requested explicitly.
    label_term = jnp.dot(label, gap,
                         preferred_element_type=jnp.float32,
                         precision=jax.lax.Precision.HIGHEST)
    base_term = jnp.sum(base, axis=0, keepdims=True)          # (1, 1)

    # Per-tile SUM (not mean); divide by the true B only in the finalize step.
    acc_ref[...] += base_term + label_term

    @pl.when(i == n_tiles - 1)
    def _finalize():
        # mean over the true B, then the trailing /2 of the reference formula.
        partial = acc_ref[...] * (0.5 / total_b)               # (1, 1)
        out_ref[...] = jnp.broadcast_to(partial, (_OUT_SUB, _OUT_LANE))


def _tpu_config():
    """Returns (input_budget_bytes, vmem_limit_bytes, num_tensorcores)."""
    kind = ""
    try:
        kind = jax.devices()[0].device_kind.lower()
    except Exception:
        pass
    is_v7 = ("v7" in kind) or ("7x" in kind)

    vmem_cap = None
    try:
        vmem_cap = int(pltpu.get_tpu_info().vmem_capacity_bytes)
    except Exception:
        vmem_cap = None

    if vmem_cap is not None:
        big_vmem = vmem_cap > (96 << 20)      # v5e/v6e class: 128 MiB physical
    else:
        # Only trust the device-kind string for the generous path.
        big_vmem = (not is_v7) and any(t in kind for t in ("v4", "v5", "v6"))

    if big_vmem:
        input_budget = 24 << 20   # ~6 MiB of f32-equivalent rows per input/step
        vmem_limit = 64 << 20
    else:                         # v7x (64 MiB physical) or unknown: stay safe
        input_budget = 8 << 20    # ~2 MiB of f32-equivalent rows per input/step
        vmem_limit = 32 << 20

    num_cores = 2 if is_v7 else 1
    return input_budget, vmem_limit, num_cores


def contrastive_loss(output1, output2, label, *, max_rows_per_tile=None):
    """output1, output2: (B, D) floats; label: (B, 1). Returns scalar f32 loss."""
    B, D = output1.shape
    assert output2.shape == (B, D)
    assert label.shape == (B, 1)

    input_budget, vmem_limit, num_cores = _tpu_config()

    itemsize = jnp.dtype(output1.dtype).itemsize
    lbl_item = jnp.dtype(label.dtype).itemsize

    # Byte-targeted tile: 2 inputs x 2 pipeline buffers of f32-equivalent rows
    # (max(itemsize, 4) so bf16 inputs still budget their f32 upcast temps)
    # must fit the per-generation DMA budget.  No artificial row cap.
    per_row_budget = 2 * 2 * max(D, 1) * max(itemsize, 4)
    tb = max(input_budget // per_row_budget, 1)
    if max_rows_per_tile is not None:
        tb = min(tb, max_rows_per_tile)
    if tb < B:
        # Label blocks are lane-dense (1, tb): the lane dim must be a multiple
        # of 128 (the (tb, D) sublane dim is then trivially a multiple of 8).
        tb = max(128, (tb // 128) * 128)
    if tb >= B:
        tb = B                    # full-dim block is always layout-legal

    n_blocks = pl.cdiv(B, tb)
    # Both TensorCores only on 2-TC chips (v7x); on single-TC chips an extra
    # serial axis just adds pipeline fill/drain.
    num_parallel = 2 if (num_cores >= 2 and n_blocks >= 2) else 1
    tiles_per_core = pl.cdiv(n_blocks, num_parallel)
    needs_mask = (B % tb != 0) or (num_parallel * tiles_per_core != n_blocks)

    def _row_block(p, i):
        # Clamp so an overshooting core still reads an in-bounds block; the
        # kernel masks those rows out of the reduction.
        return jnp.minimum(p * tiles_per_core + i, n_blocks - 1)

    kernel = functools.partial(_contrastive_kernel, total_b=B, tile_b=tb,
                               needs_mask=needs_mask)

    # Lane-dense label: (B, 1) -> (1, B) is free (same linear layout in HBM).
    label_row = label.reshape(1, B)

    cost = pl.CostEstimate(
        flops=6 * B * D + 10 * B,
        transcendentals=B,                       # one sqrt per row
        bytes_accessed=2 * B * D * itemsize + B * lbl_item
                       + num_parallel * _OUT_SUB * _OUT_LANE * 4,
    )

    out = pl.pallas_call(
        kernel,
        out_shape=jax.ShapeDtypeStruct((num_parallel * _OUT_SUB, _OUT_LANE),
                                       jnp.float32),
        grid_spec=pltpu.PrefetchScalarGridSpec(
            num_scalar_prefetch=0,
            grid=(num_parallel, tiles_per_core),
            in_specs=[
                pl.BlockSpec((tb, D), lambda p, i: (_row_block(p, i), 0)),
                pl.BlockSpec((tb, D), lambda p, i: (_row_block(p, i), 0)),
                pl.BlockSpec((1, tb), lambda p, i: (0, _row_block(p, i))),
            ],
            out_specs=pl.BlockSpec((_OUT_SUB, _OUT_LANE), lambda p, i: (p, 0)),
            scratch_shapes=[pltpu.VMEM((1, 1), jnp.float32)],
        ),
        compiler_params=pltpu.CompilerParams(
            dimension_semantics=("parallel", "arbitrary"),
            vmem_limit_bytes=vmem_limit,
        ),
        cost_estimate=cost,
    )(output1, output2, label_row)

    # One scalar per core at [p*8, 0]; sum the per-core partials.
    return jnp.sum(out[::_OUT_SUB, 0])


def _reference(output1, output2, label):
    # Pure-JAX reference for a sanity check.
    o1 = output1.astype(jnp.float32)
    o2 = output2.astype(jnp.float32)
    lbl = label.astype(jnp.float32)
    diff = o1 - o2 + PAIRWISE_EPS
    dist = jnp.sqrt(jnp.sum(diff * diff, axis=-1, keepdims=True))
    loss = jnp.mean((1.0 - lbl) * dist**2 / 2.0
                    + lbl * jnp.clip(MARGIN - dist, 0.0, None) ** 2) / 2.0
    return loss


if __name__ == "__main__":
    key = jax.random.PRNGKey(0)
    k1, k2, k3 = jax.random.split(key, 3)

    # Small shapes consistent with a pairwise-embedding contrastive loss.
    B, D = 8, 32
    output1 = jax.random.normal(k1, (B, D), dtype=jnp.float32)
    output2 = jax.random.normal(k2, (B, D), dtype=jnp.float32)
    label = jax.random.bernoulli(k3, 0.5, (B, 1)).astype(jnp.float32)

    loss = contrastive_loss(output1, output2, label)
    jax.block_until_ready(loss)
    ref = _reference(output1, output2, label)
    assert jnp.allclose(loss, ref, rtol=1e-5, atol=1e-6), (loss, ref)

    # Also exercise the multi-tile + ragged-masking path (forced small tile).
    kk1, kk2, kk3 = jax.random.split(jax.random.PRNGKey(1), 3)
    B2, D2 = 300, 64
    o1b = jax.random.normal(kk1, (B2, D2), dtype=jnp.float32)
    o2b = jax.random.normal(kk2, (B2, D2), dtype=jnp.float32)
    lblb = jax.random.bernoulli(kk3, 0.5, (B2, 1)).astype(jnp.float32)
    loss2 = contrastive_loss(o1b, o2b, lblb, max_rows_per_tile=128)
    jax.block_until_ready(loss2)
    ref2 = _reference(o1b, o2b, lblb)
    assert jnp.allclose(loss2, ref2, rtol=1e-5, atol=1e-5), (loss2, ref2)

    print("KERNEL_OK")
</pallas_src>

<mosaic_0001>
module attributes {stable_mosaic.version = 11 : i64} {
  func.func @_contrastive_kernel(%arg0: i32, %arg1: i32, %arg2: memref<8x32xf32, #tpu.memory_space<vmem>>, %arg3: memref<8x32xf32, #tpu.memory_space<vmem>>, %arg4: memref<1x8xf32, #tpu.memory_space<vmem>>, %arg5: memref<8x128xf32, #tpu.memory_space<vmem>>, %arg6: memref<1x1xf32, #tpu.memory_space<vmem>>) attributes {dimension_semantics = [#tpu.dimension_semantics<parallel>, #tpu.dimension_semantics<arbitrary>], iteration_bounds = array<i64: 1, 1>, scalar_prefetch = 0 : i64, scratch_operands = 1 : i64, tpu.core_type = #tpu.core_type<tc>, window_params = [{transform_indices = @transform_0, window_bounds = array<i64: 8, 32>}, {transform_indices = @transform_1, window_bounds = array<i64: 8, 32>}, {transform_indices = @transform_2, window_bounds = array<i64: 1, 8>}, {transform_indices = @transform_3, window_bounds = array<i64: 8, 128>}]} {
    %c0_i32 = arith.constant 0 : i32
    %0 = arith.cmpi eq, %arg1, %c0_i32 : i32
    %1 = arith.extui %0 : i1 to i32
    %c0_i32_0 = arith.constant 0 : i32
    %2 = arith.cmpi ne, %1, %c0_i32_0 : i32
    scf.if %2 {
      %cst_18 = arith.constant 0.000000e+00 : f32
      %31 = vector.broadcast %cst_18 : f32 to vector<1x1xf32>
      %c0_19 = arith.constant 0 : index
      %c0_20 = arith.constant 0 : index
      %32 = vector.load %arg6[%c0_19, %c0_20] : memref<1x1xf32, #tpu.memory_space<vmem>>, vector<1x1xf32>
      tpu.vector_store %arg6[%c0_19, %c0_20], %31 {strides = array<i32>} : memref<1x1xf32, #tpu.memory_space<vmem>>, vector<1x1xf32>,
    } else {
    }
    %c0 = arith.constant 0 : index
    %c0_1 = arith.constant 0 : index
    %3 = vector.load %arg2[%c0, %c0_1] : memref<8x32xf32, #tpu.memory_space<vmem>>, vector<8x32xf32>
    %c0_2 = arith.constant 0 : index
    %c0_3 = arith.constant 0 : index
    %4 = vector.load %arg3[%c0_2, %c0_3] : memref<8x32xf32, #tpu.memory_space<vmem>>, vector<8x32xf32>
    %c0_4 = arith.constant 0 : index
    %c0_5 = arith.constant 0 : index
    %5 = vector.load %arg4[%c0_4, %c0_5] : memref<1x8xf32, #tpu.memory_space<vmem>>, vector<1x8xf32>
    %6 = arith.subf %3, %4 : vector<8x32xf32>
    %cst = arith.constant 9.99999997E-7 : f32
    %7 = vector.broadcast %cst : f32 to vector<8x32xf32>
    %8 = arith.addf %6, %7 : vector<8x32xf32>
    %9 = arith.mulf %8, %8 : vector<8x32xf32>
    %cst_6 = arith.constant dense<0.000000e+00> : vector<8xf32>
    %10 = vector.multi_reduction <add>, %9, %cst_6 [1] : vector<8x32xf32> to vector<8xf32>
    %11 = vector.shape_cast %10 : vector<8xf32> to vector<8x1xf32>
    %12 = math.sqrt %11 : vector<8x1xf32>
    %cst_7 = arith.constant 2.000000e+00 : f32
    %13 = vector.broadcast %cst_7 : f32 to vector<8x1xf32>
    %14 = arith.subf %13, %12 : vector<8x1xf32>
    %cst_8 = arith.constant 0.000000e+00 : f32
    %15 = vector.broadcast %cst_8 : f32 to vector<8x1xf32>
    %16 = arith.maximumf %14, %15 : vector<8x1xf32>
    %cst_9 = arith.constant 5.000000e-01 : f32
    %17 = vector.broadcast %cst_9 : f32 to vector<8x1xf32>
    %18 = arith.mulf %17, %11 : vector<8x1xf32>
    %19 = arith.mulf %16, %16 : vector<8x1xf32>
    %20 = arith.subf %19, %18 : vector<8x1xf32>
    %cst_10 = arith.constant dense<0.000000e+00> : vector<1x1xf32>
    %21 = tpu.matmul %5, %20, %cst_10 {dimension_numbers = #tpu.dot_dimension_numbers<[1], [0], [0], [1], [0, 0, 1, 1], [], []>, precision = #tpu.contract_precision<fp32>} : vector<1x8xf32>, vector<8x1xf32>, vector<1x1xf32> -> vector<1x1xf32>
    %cst_11 = arith.constant dense<0.000000e+00> : vector<1xf32>
    %22 = vector.multi_reduction <add>, %18, %cst_11 [0] : vector<8x1xf32> to vector<1xf32>
    %23 = vector.shape_cast %22 : vector<1xf32> to vector<1x1xf32>
    %c0_12 = arith.constant 0 : index
    %c0_13 = arith.constant 0 : index
    %24 = vector.load %arg6[%c0_12, %c0_13] : memref<1x1xf32, #tpu.memory_space<vmem>>, vector<1x1xf32>
    %25 = arith.addf %23, %21 : vector<1x1xf32>
    %26 = arith.addf %24, %25 : vector<1x1xf32>
    %c0_14 = arith.constant 0 : index
    %c0_15 = arith.constant 0 : index
    %27 = vector.load %arg6[%c0_14, %c0_15] : memref<1x1xf32, #tpu.memory_space<vmem>>, vector<1x1xf32>
    tpu.vector_store %arg6[%c0_14, %c0_15], %26 {strides = array<i32>} : memref<1x1xf32, #tpu.memory_space<vmem>>, vector<1x1xf32>,
    %c0_i32_16 = arith.constant 0 : i32
    %28 = arith.cmpi eq, %arg1, %c0_i32_16 : i32
    %29 = arith.extui %28 : i1 to i32
    %c0_i32_17 = arith.constant 0 : i32
    %30 = arith.cmpi ne, %29, %c0_i32_17 : i32
    scf.if %30 {
      %c0_18 = arith.constant 0 : index
      %c0_19 = arith.constant 0 : index
      %31 = vector.load %arg6[%c0_18, %c0_19] : memref<1x1xf32, #tpu.memory_space<vmem>>, vector<1x1xf32>
      %cst_20 = arith.constant 6.250000e-02 : f32
      %32 = vector.broadcast %cst_20 : f32 to vector<1x1xf32>
      %33 = arith.mulf %31, %32 : vector<1x1xf32>
      %34 = vector.shape_cast %33 : vector<1x1xf32> to vector<1x1xf32>
      %35 = vector.broadcast %34 : vector<1x1xf32> to vector<8x128xf32>
      %c0_21 = arith.constant 0 : index
      %c0_22 = arith.constant 0 : index
      %36 = vector.load %arg5[%c0_21, %c0_22] : memref<8x128xf32, #tpu.memory_space<vmem>>, vector<8x128xf32>
      tpu.vector_store %arg5[%c0_21, %c0_22], %35 {strides = array<i32>} : memref<8x128xf32, #tpu.memory_space<vmem>>, vector<8x128xf32>,
    } else {
    }
    return
  }
  func.func @transform_0(%arg0: i32, %arg1: i32) -> (i32, i32) {
    %c1_i32 = arith.constant 1 : i32
    %0 = arith.muli %arg0, %c1_i32 : i32
    %1 = arith.addi %0, %arg1 : i32
    %c0_i32 = arith.constant 0 : i32
    %2 = arith.minsi %1, %c0_i32 : i32
    %c0_i32_0 = arith.constant 0 : i32
    %c0_i32_1 = arith.constant 0 : i32
    return %2, %c0_i32_0 : i32, i32
  }
  func.func @transform_1(%arg0: i32, %arg1: i32) -> (i32, i32) {
    %c1_i32 = arith.constant 1 : i32
    %0 = arith.muli %arg0, %c1_i32 : i32
    %1 = arith.addi %0, %arg1 : i32
    %c0_i32 = arith.constant 0 : i32
    %2 = arith.minsi %1, %c0_i32 : i32
    %c0_i32_0 = arith.constant 0 : i32
    %c0_i32_1 = arith.constant 0 : i32
    return %2, %c0_i32_0 : i32, i32
  }
  func.func @transform_2(%arg0: i32, %arg1: i32) -> (i32, i32) {
    %c1_i32 = arith.constant 1 : i32
    %0 = arith.muli %arg0, %c1_i32 : i32
    %1 = arith.addi %0, %arg1 : i32
    %c0_i32 = arith.constant 0 : i32
    %2 = arith.minsi %1, %c0_i32 : i32
    %c0_i32_0 = arith.constant 0 : i32
    %c0_i32_1 = arith.constant 0 : i32
    return %c0_i32_0, %2 : i32, i32
  }
  func.func @transform_3(%arg0: i32, %arg1: i32) -> (i32, i32) {
    %c0_i32 = arith.constant 0 : i32
    %c0_i32_0 = arith.constant 0 : i32
    return %arg0, %c0_i32 : i32, i32
  }
}

</mosaic_0001>

<bundles_post_ra>
// kernel: tpu_custom_call.1
= control target key start
LH: loop header
LB: loop body
LE: loop exit
PB: predicated region body
PF: predicated region fallthrough
CT: control target
= control target key end

     0   :  { %8 = vsyncpa [#allocation4], 0  ;;  %s802_s0 = inlined_call_operand.hbm [shape: f32[8,32], index: 0, kind: input, shape index: {}]   ;;  %s803_s1 = inlined_call_operand.hbm [shape: f32[8,32], index: 1, kind: input, shape index: {}]   ;;  %s804_s2 = inlined_call_operand.vmem [shape: f32[1,8], index: 2, kind: input, shape index: {}]   ;;  %s805_s3 = inlined_call_operand.hbm [shape: f32[8,128], index: 3, kind: output, shape index: {}]  }
   0x1   :  { %9 = vsyncpa [#allocation7], 0 }
   0x2   :  { %10 = vsyncpa [#allocation5], 0  ;;  %s729_s12 = smov [#allocation3]   ;;  %s730_s14 = smov [#allocation6]  }
   0x3   :  { %s22_s13 = sshll.u32 %s729_s12, 4  ;;  %s37_s15 = sshll.u32 %s730_s14, 4  ;;  %s23_s13 = int_to_ptr.vmem [resolvable:$true] %s22_s13  ;;  %s38_s15 = int_to_ptr.vmem [resolvable:$true] %s37_s15 }
   0x4   :  { %s657_s18 = scalar_lea.hbm %s802_s0, 128 }
   0x5   :  { %p658_p0 = scmp.ne.s32.totalorder %s802_s0, %s657_s18  ;;  %p661_p1 = scmp.lt.u32.totalorder %s657_s18, %s802_s0 }
   0x7   :  { %p663_p2 = pnand %p661_p1, %p658_p0 }
   0x9   :  { %666 = shalt.err (!%p663_p2)
}
   0xa   :  { %s667_s23 = scalar_lea.vmem %s23_s13, 128  ;;  %p672_p4 = scmp.lt.s32.totalorder %s23_s13, %s23_s13 }
   0xb   :  { %p668_p3 = scmp.ne.s32.totalorder %s23_s13, %s667_s23  ;;  %p673_p5 = scmp.lt.s32.totalorder %s667_s23, %s667_s23 }
   0xd   :  { %p674_p6 = por %p673_p5, %p672_p4 }
   0xf   :  { %p675_p7 = pnand %p674_p6, %p668_p3 }
  0x11   :  { %678 = shalt.err (!%p675_p7)
}
  0x12   :  { %25 = dma.hbm_to_vmem [thread:$0]  %s802_s0, 128, %s23_s13, [#allocation4]  }
  0x13   :  { %s679_s28 = scalar_lea.hbm %s803_s1, 128 }
  0x14   :  { %p680_p8 = scmp.ne.s32.totalorder %s803_s1, %s679_s28  ;;  %p683_p9 = scmp.lt.u32.totalorder %s679_s28, %s803_s1 }
  0x16   :  { %p685_p10 = pnand %p683_p9, %p680_p8 }
  0x18   :  { %688 = shalt.err (!%p685_p10)
}
  0x19   :  { %s689_s6 = scalar_lea.vmem %s38_s15, 128  ;;  %p694_p12 = scmp.lt.s32.totalorder %s38_s15, %s38_s15 }
  0x1a   :  { %p690_p11 = scmp.ne.s32.totalorder %s38_s15, %s689_s6  ;;  %p695_p13 = scmp.lt.s32.totalorder %s689_s6, %s689_s6 }
  0x1c   :  { %p696_p0 = por %p695_p13, %p694_p12 }
  0x1e   :  { %p697_p1 = pnand %p696_p0, %p690_p11 }
  0x20   :  { %700 = shalt.err (!%p697_p1)
}
  0x21   :  { %40 = dma.hbm_to_vmem [thread:$0]  %s803_s1, 128, %s38_s15, [#allocation7]  }
  0x22   :  { %723 = dma.done.wait [#allocation4], 128  }
  0x23   :  { %724 = vsyncadd [#allocation4], 4294967168 }
  0x24   :  { %725 = dma.done.wait [#allocation7], 128  }
  0x25   :  { %726 = vsyncadd [#allocation7], 4294967168  ;;  %v85_v0 = vld [vmem:[#allocation3] sm:$0xff]  ;;  %v86_v1 = vld [vmem:[#allocation6] sm:$0xff]  ;;  %vm91_vm0 = vcmask 261120   ;;  %v731_v6 = vmov 0.0   ;;  %v574_v57 = vlaneseq }
  0x26   :  { %v88_v2 = vsub.f32 %v85_v0, %v86_v1  ;;  %618 = vmatprep.subr.mxu0 %v731_v6  ;;  %623 = vmatprep.subr.mxu1 %v731_v6  ;;  %vm732_vm1 = vmmov 0   ;;  %v87_v8 = vld [vmem:[%s804_s2] sm:$0x1]  ;;  %vm107_vm2 = vcmask 64512   ;;  %vm83_vm5 = vcmask 0   ;;  %s734_s2 = smov [#allocation8]  }
  0x27   :  { %620 = vmatprep.mubr.msk.f32.mxu0 %vm732_vm1, %v731_v6  ;;  %625 = vmatprep.mubr.msk.f32.mxu1 %vm732_vm1, %v731_v6  ;;  %v109_v9 = vsel %vm107_vm2, %v87_v8, 0  ;;  %84 = vst.msk [vmem:[#allocation2] sm:$0x1] %vm83_vm5, %v731_v6  ;;  %v733_v30 = vmov 0   ;;  %v575_v58 = vshrl.u32 %v574_v57, 7  ;;  %s589_s9 = sshll.u32 %s734_s2, 4  ;;  %s590_s9 = int_to_ptr.vmem [resolvable:$true] %s589_s9 }
  0x28   :  { %v89_v3 = vadd.f32 1e-06, %v88_v2  ;;  %v177_v10 = vand.u32 4294901760, %v109_v9  ;;  %654 = vset.pattern.permute.xlu0 %v733_v30  ;;  %s701_s10 = scalar_lea.vmem %s590_s9, 128  ;;  %p706_p3 = scmp.lt.s32.totalorder %s590_s9, %s590_s9 }
  0x29   :  { %v576_v59 = vsub.s32 0, %v575_v58  ;;  %p702_p2 = scmp.ne.s32.totalorder %s590_s9, %s701_s10  ;;  %p707_p4 = scmp.lt.s32.totalorder %s701_s10, %s701_s10 }
  0x2a   :  { %v90_v4 = vmul.f32 %v89_v3, %v89_v3  ;;  %v178_v12 = vsub.f32 %v109_v9, %v177_v10 }
  0x2b   :  { %p708_p5 = por %p707_p4, %p706_p3 }
  0x2c   :  { %v92_v5 = vsel %vm91_vm0, %v90_v4, 0.0  ;;  %v179_v17 = vand.u32 4294901760, %v178_v12 }
  0x2d   :  { %93 = vadd.xlane.f32.xlu0 %v92_v5  ;;  %p709_p6 = pnand %p708_p5, %p702_p2 }
  0x2e   :  { %v180_v20 = vsub.f32 %v178_v12, %v179_v17  ;;  %v563_v54 = vld [vmem:[#allocation2] sm:$0x1] }
  0x30   :  { %v181_v24 = vand.u32 4294901760, %v180_v20 }
  0xba   :  { %v94_v7 = vpop.xlane.xlu0 %93 }
  0xbb   :  { %655 = vrsqrt.f32 %v94_v7  ;;  %vm97_vm3 = vcmp.eq.f32.partialorder %v94_v7, inf  ;;  %v100_v14 = vand.u32 2147483648, %v94_v7  ;;  %vm99_vm4 = vcmp.eq.f32.partialorder %v94_v7, 0.0 }
  0xbc   :  { %v104_v21 = vmul.f32 0.5, %v94_v7 }
  0xbe   :  { %v557_v31 = vrot.slane %v104_v21, 4 }
  0xc0   :  { %v558_v34 = vadd.f32 %v557_v31, %v104_v21 }
  0xc2   :  { %v559_v37 = vrot.slane %v558_v34, 2 }
  0xc4   :  { %v560_v41 = vadd.f32 %v559_v37, %v558_v34 }
  0xc5   :  { %v656_v11 = vpop.eup %655 }
  0xc6   :  { %v96_v13 = vmul.f32 %v656_v11, %v94_v7  ;;  %v561_v48 = vrot.slane %v560_v41, 1 }
  0xc8   :  { %v98_v15 = vsel %vm97_vm3, %v94_v7, %v96_v13  ;;  %v562_v52 = vadd.f32 %v561_v48, %v560_v41 }
  0xc9   :  { %v101_v16 = vsel %vm99_vm4, %v100_v14, %v98_v15 }
  0xca   :  { %v102_v18 = vsub.f32 2.0, %v101_v16 }
  0xcc   :  { %v103_v19 = vmax.f32 %v102_v18, 0.0 }
  0xce   :  { %v105_v22 = vmul.f32 %v103_v19, %v103_v19 }
  0xd0   :  { %v106_v23 = vsub.f32 %v105_v22, %v104_v21 }
  0xd2   :  { %v112_v25 = vand.u32 4294901760, %v106_v23 }
  0xd4   :  { %619 = vmatpush3.msra.mxu0 %v112_v25  ;;  %v189_v26 = vsub.f32 %v106_v23, %v112_v25 }
  0xd5   :  { %621 = vmatmul.mubr.f32.vlgmr.msra.gmra.mrb[0].mxu0 %v181_v24  ;;  %628 = vmatprep.subr.mxu0 %v731_v6 }
  0xd6   :  { %629 = vmatpush3.msra.mxu0 %v189_v26  ;;  %630 = vmatprep.mubr.msk.f32.mxu0 %vm732_vm1, %v731_v6  ;;  %v190_v27 = vand.u32 4294901760, %v189_v26 }
  0xd7   :  { %638 = vmatprep.subr.mxu0 %v731_v6 }
  0xd8   :  { %v191_v28 = vsub.f32 %v189_v26, %v190_v27 }
  0xd9   :  { %631 = vmatmul.mubr.f32.vlgmr.msra.gmra.mrb[2].mxu0 %v178_v12 }
  0xda   :  { %639 = vmatpush3.msra.mxu0 %v190_v27  ;;  %v192_v29 = vand.u32 4294901760, %v191_v28  ;;  %640 = vmatprep.mubr.msk.f32.mxu0 %vm732_vm1, %v731_v6 }
  0xdc   :  { %624 = vmatpush3.msra.mxu1 %v192_v29 }
  0xdd   :  { %626 = vmatmul.mubr.f32.vlgmr.msra.gmra.mrb[0].mxu1 %v177_v10  ;;  %633 = vmatprep.subr.mxu1 %v731_v6 }
  0xde   :  { %634 = vmatpush3.msra.mxu1 %v112_v25  ;;  %635 = vmatprep.mubr.msk.f32.mxu1 %vm732_vm1, %v731_v6 }
  0xdf   :  { %643 = vmatprep.subr.mxu1 %v731_v6  ;;  %641 = vmatmul.mubr.f32.vlgmr.msra.gmra.mrb[4].mxu0 %v177_v10 }
  0xe1   :  { %636 = vmatmul.mubr.f32.vlgmr.msra.gmra.mrb[2].mxu1 %v179_v17 }
  0xe2   :  { %644 = vmatpush3.msra.mxu1 %v112_v25  ;;  %645 = vmatprep.mubr.msk.f32.mxu1 %vm732_vm1, %v731_v6 }
  0xe5   :  { %646 = vmatmul.mubr.f32.vlgmr.msra.gmra.mrb[4].mxu1 %v177_v10 }
 0x1a8   :  { %v183_v32 = vpop.f32.mrb[0].mxu0 }
 0x1a9   :  { %v622_v33 = vpop.f32.mrb[1].mxu0 }
 0x1ac   :  { %v333_v35 = vpop.f32.mrb[2].mxu0 }
 0x1ad   :  { %v632_v36 = vpop.f32.mrb[3].mxu0 }
 0x1b0   :  { %v259_v38 = vpop.f32.mrb[0].mxu1 }
 0x1b1   :  { %v260_v39 = vadd.f32 %v259_v38, %v183_v32  ;;  %v627_v40 = vpop.f32.mrb[1].mxu1 }
 0x1b2   :  { %v481_v42 = vpop.f32.mrb[4].mxu0 }
 0x1b3   :  { %v334_v43 = vadd.f32 %v333_v35, %v260_v39  ;;  %v642_v44 = vpop.f32.mrb[5].mxu0 }
 0x1b4   :  { %v407_v45 = vpop.f32.mrb[2].mxu1 }
 0x1b5   :  { %v408_v46 = vadd.f32 %v407_v45, %v334_v43  ;;  %v637_v47 = vpop.f32.mrb[3].mxu1 }
 0x1b7   :  { %v482_v49 = vadd.f32 %v481_v42, %v408_v46 }
 0x1b8   :  { %v553_v50 = vpop.f32.mrb[4].mxu1 }
 0x1b9   :  { %v554_v51 = vadd.f32 %v553_v50, %v482_v49  ;;  %v647_v53 = vpop.f32.mrb[5].mxu1 }
 0x1bb   :  { %v564_v55 = vadd.f32 %v562_v52, %v554_v51 }
 0x1bd   :  { %v565_v56 = vadd.f32 %v564_v55, %v563_v54 }
 0x1bf   :  { %567 = vst.msk [vmem:[#allocation2] sm:$0x1] %vm83_vm5, %v565_v56 }
 0x1c6   :  { %v571_v60 = vld [vmem:[#allocation2] sm:$0x1] }
 0x1c7   :  { %v572_v61 = vmul.f32 0.0625, %v571_v60 }
 0x1c9   :  { %v577_v62 = vrot.slane %v572_v61, %v576_v59 }
 0x1cb   :  { %579 = vperm.xlu0 %654, %v577_v62  }
 0x24a   :  { %v580_v63 = vpop.permute.xlu0 %579 }
 0x24b   :  { %582 = vst [vmem:[#allocation8] sm:$0xff] %v580_v63 }
 0x24c   :  { %712 = shalt.err (!%p709_p6)
}
 0x24d   :  { %s713_s13 = scalar_lea.hbm %s805_s3, 128 }
 0x24e   :  { %p714_p7 = scmp.ne.s32.totalorder %s805_s3, %s713_s13  ;;  %p717_p8 = scmp.lt.u32.totalorder %s713_s13, %s805_s3 }
 0x250   :  { %p719_p9 = pnand %p717_p8, %p714_p7 }
 0x252   :  { %722 = shalt.err (!%p719_p9)
}
 0x253   :  { %592 = dma.vmem_to_hbm [thread:$0]  %s590_s9, 128, %s805_s3, [#allocation5]  }
 0x254   :  { %727 = dma.done.wait [#allocation5], 128  }
 0x255   :  { %728 = vsyncadd [#allocation5], 4294967168 }
 0x256   :  { %596 = vsyncpa [#allocation4], 1 }
 0x257   :  { %597 = vsyncpa [#allocation7], 1 }
 0x258   :  { %598 = vsyncpa [#allocation5], 1 }

</bundles_post_ra>
